<compile_context>
chip_gen: v5e
topology: v5e:2x2
jax: 0.10.0
libtpu: 0.0.40
codegen_flags: <defaults>
</compile_context>

<pallas_src>
import numpy as np
import jax
import jax.numpy as jnp
from jax.experimental import pallas as pl
from jax.experimental.pallas import tpu as pltpu

# Reference / host-side folding matmuls must be exact f32 (the in-kernel small
# matmuls are exact f32 FMA), otherwise the tight-tolerance check is unfair.
jax.config.update("jax_default_matmul_precision", "highest")

BN_EPS = 1e-5
_MAX_TILE = 128 * 1024          # hard cap on atoms per tile (lane axis)


def _round_up(n: int, m: int) -> int:
    return (n + m - 1) // m * m


def _vmem_capacity_bytes() -> int:
    """Physical VMEM of this generation (v5e/v6e: 128 MiB, v7x: 64 MiB)."""
    try:
        return int(pltpu.get_tpu_info().vmem_capacity_bytes)
    except Exception:
        return 64 * 1024 * 1024          # conservative (v7x-sized) fallback


def _pick_tiling(n_atoms: int, per_col_bytes: int, max_tile: int):
    """Atom-tile size from the VMEM budget; keep >=2 tiles for megacore."""
    cap = _vmem_capacity_bytes()
    vmem_limit = cap * 3 // 4                       # scoped limit we request
    block_budget = vmem_limit // 2                  # headroom for weights/temps
    t = block_budget // max(per_col_bytes, 1)
    t = max(128, min(max_tile, t) // 128 * 128)     # lane-align, clamp
    n128 = _round_up(n_atoms, 128)
    if n128 >= 256:                                 # >=2 tiles so v7x's two TCs both get work
        half = _round_up((n128 + 1) // 2, 128)
        t = min(t, half)
    t = min(t, n128)
    n_pad = _round_up(n128, t)
    return t, n_pad // t, n_pad, int(vmem_limit)


def _matmul_cm(w, x):
    """Channel-major matmul: w [Co,Ci] f32, x [Ci,T] -> [Co,T] f32.

    For tiny channel counts the MXU would be <4% utilized, so use an unrolled
    VPU broadcast-FMA (f32, so it is also v5e-safe); otherwise use the MXU with
    bf16 inputs and f32 accumulation."""
    co, ci = w.shape
    if co * ci <= 256:
        x32 = x.astype(jnp.float32)
        acc = w[:, 0:1] * x32[0:1, :]
        for k in range(1, ci):
            acc = acc + w[:, k:k + 1] * x32[k:k + 1, :]
        return acc
    return jnp.dot(w.astype(x.dtype), x, preferred_element_type=jnp.float32)


# ---------------------------------------------------------------------------
# Pass 1: row-major -> channel-major transpose (+cast) + BN1 shifted stats
# ---------------------------------------------------------------------------
def _transpose_stats_kernel(x_ref, p_ref, xt_ref, s_ref, q_ref):
    x = x_ref[...]                                   # [TILE, C2] f32 row-major
    xt = x.T                                         # [C2, TILE] channel-major
    xt_ref[...] = xt.astype(xt_ref.dtype)
    xc = xt - p_ref[...]                             # shift by pivot (stable variance)
    s_ref[...] = jnp.sum(xc, axis=1, keepdims=True)[None]        # [1, C2, 1]
    q_ref[...] = jnp.sum(xc * xc, axis=1, keepdims=True)[None]   # [1, C2, 1]


def _stats_pass(x_rows, pivot, tile, num_tiles, storage_dtype, vmem_limit):
    n_pad, c2 = x_rows.shape
    act_b = jnp.dtype(storage_dtype).itemsize
    cost = pl.CostEstimate(
        flops=int(4 * c2 * n_pad), transcendentals=0,
        bytes_accessed=int(c2 * n_pad * (4 + act_b) + 8 * num_tiles * c2))
    xT, s, q = pl.pallas_call(
        _transpose_stats_kernel,
        out_shape=(jax.ShapeDtypeStruct((c2, n_pad), storage_dtype),
                   jax.ShapeDtypeStruct((num_tiles, c2, 1), jnp.float32),
                   jax.ShapeDtypeStruct((num_tiles, c2, 1), jnp.float32)),
        grid=(num_tiles,),
        in_specs=[pl.BlockSpec((tile, c2), lambda i: (i, 0)),
                  pl.BlockSpec((c2, 1), lambda i: (0, 0))],
        out_specs=(pl.BlockSpec((c2, tile), lambda i: (0, i)),
                   pl.BlockSpec((1, c2, 1), lambda i: (i, 0, 0)),
                   pl.BlockSpec((1, c2, 1), lambda i: (i, 0, 0))),
        compiler_params=pltpu.CompilerParams(
            dimension_semantics=("parallel",), vmem_limit_bytes=vmem_limit),
        cost_estimate=cost,
    )(x_rows, pivot)
    return xT, s.sum(axis=0)[:, 0], q.sum(axis=0)[:, 0]


# ---------------------------------------------------------------------------
# Pass 2: h = relu(W1' @ x + b1')  (BN1 folded) + BN2 shifted stats (f32 h)
# ---------------------------------------------------------------------------
def _lin1_relu_stats_kernel(x_ref, w_ref, b_ref, p_ref, h_ref, s_ref, q_ref):
    h = _matmul_cm(w_ref[...], x_ref[...]) + b_ref[...]      # [C_IN, TILE] f32
    h = jnp.maximum(h, 0.0)
    h_ref[...] = h.astype(h_ref.dtype)                       # bf16 store
    hc = h - p_ref[...]                                      # stats from f32 h
    s_ref[...] = jnp.sum(hc, axis=1, keepdims=True)[None]
    q_ref[...] = jnp.sum(hc * hc, axis=1, keepdims=True)[None]


def _lin_relu_stats_pass(xT, w, b, pivot, tile, num_tiles, storage_dtype, vmem_limit):
    c2, n_pad = xT.shape
    c_out = w.shape[0]
    act_b = jnp.dtype(storage_dtype).itemsize
    cost = pl.CostEstimate(
        flops=int(2 * c_out * c2 * n_pad + 6 * c_out * n_pad), transcendentals=0,
        bytes_accessed=int(n_pad * (c2 + c_out) * act_b
                           + 4 * (c_out * c2 + 2 * c_out + 2 * num_tiles * c_out)))
    hT, s, q = pl.pallas_call(
        _lin1_relu_stats_kernel,
        out_shape=(jax.ShapeDtypeStruct((c_out, n_pad), storage_dtype),
                   jax.ShapeDtypeStruct((num_tiles, c_out, 1), jnp.float32),
                   jax.ShapeDtypeStruct((num_tiles, c_out, 1), jnp.float32)),
        grid=(num_tiles,),
        in_specs=[pl.BlockSpec((c2, tile), lambda i: (0, i)),
                  pl.BlockSpec((c_out, c2), lambda i: (0, 0)),
                  pl.BlockSpec((c_out, 1), lambda i: (0, 0)),
                  pl.BlockSpec((c_out, 1), lambda i: (0, 0))],
        out_specs=(pl.BlockSpec((c_out, tile), lambda i: (0, i)),
                   pl.BlockSpec((1, c_out, 1), lambda i: (i, 0, 0)),
                   pl.BlockSpec((1, c_out, 1), lambda i: (i, 0, 0))),
        compiler_params=pltpu.CompilerParams(
            dimension_semantics=("parallel",), vmem_limit_bytes=vmem_limit),
        cost_estimate=cost,
    )(xT, w, b, pivot)
    return hT, s.sum(axis=0)[:, 0], q.sum(axis=0)[:, 0]


# ---------------------------------------------------------------------------
# Pass 3: y = relu(W2' @ h + b2')   (BN2 folded into W2')
# ---------------------------------------------------------------------------
def _lin2_relu_kernel(x_ref, w_ref, b_ref, o_ref):
    y = _matmul_cm(w_ref[...], x_ref[...]) + b_ref[...]
    o_ref[...] = jnp.maximum(y, 0.0).astype(o_ref.dtype)


def _lin_relu_pass(hT, w, b, tile, num_tiles, vmem_limit):
    c_in, n_pad = hT.shape
    c_out = w.shape[0]
    cost = pl.CostEstimate(
        flops=int(2 * c_out * c_in * n_pad + 2 * c_out * n_pad), transcendentals=0,
        bytes_accessed=int(n_pad * (c_in * hT.dtype.itemsize + c_out * 4)
                           + 4 * (c_out * c_in + c_out)))
    return pl.pallas_call(
        _lin2_relu_kernel,
        out_shape=jax.ShapeDtypeStruct((c_out, n_pad), jnp.float32),
        grid=(num_tiles,),
        in_specs=[pl.BlockSpec((c_in, tile), lambda i: (0, i)),
                  pl.BlockSpec((c_out, c_in), lambda i: (0, 0)),
                  pl.BlockSpec((c_out, 1), lambda i: (0, 0))],
        out_specs=pl.BlockSpec((c_out, tile), lambda i: (0, i)),
        compiler_params=pltpu.CompilerParams(
            dimension_semantics=("parallel",), vmem_limit_bytes=vmem_limit),
        cost_estimate=cost,
    )(hT, w, b)


# ---------------------------------------------------------------------------
# Full ConvolutionalLayer forward on the gathered matrix view
# ---------------------------------------------------------------------------
def conv_layer_forward(x1, params, *, storage_dtype=jnp.bfloat16,
                       channel_major_out=False, max_tile=_MAX_TILE):
    """x1: [N_atoms, 2*C_in] matrix view of the gathered ptensors1 (identical to
    x1.torch() in the PyTorch module).  Returns [N_atoms, C_out] (row-major), or
    [C_out, N_atoms] if channel_major_out=True (preferred when stacking layers,
    to avoid an extra transpose per layer)."""
    x1 = jnp.asarray(x1, jnp.float32)
    n_atoms, c2 = x1.shape
    c_in = params["w1"].shape[1]
    c_out = params["w2"].shape[1]
    assert params["w1"].shape[0] == c2 and params["w2"].shape[0] == c_in

    # ---- atom tiling from the per-generation VMEM budget -------------------
    act_b = jnp.dtype(storage_dtype).itemsize
    per_col_bytes = max(2 * (c2 * 4 + c2 * act_b),          # pass 1 (dbl-buffered)
                        2 * (c2 * act_b + c_in * act_b),    # pass 2
                        2 * (c_in * act_b + c_out * 4))     # pass 3
    tile, num_tiles, n_pad, vmem_limit = _pick_tiling(n_atoms, per_col_bytes, max_tile)
    n_extra = n_pad - n_atoms
    inv_n = 1.0 / float(n_atoms)

    # only host-side prep: zero-pad rows to a multiple of the tile
    x_rows = jnp.pad(x1, ((0, n_extra), (0, 0))) if n_extra else x1
    pivot1 = x1[0:1, :].T                                    # [c2,1] variance pivot

    # ---- pass 1: transpose+cast + BN1 stats, fold BN1 into Linear1 ---------
    xT, s1, q1 = _stats_pass(x_rows, pivot1, tile, num_tiles, storage_dtype, vmem_limit)
    p1 = pivot1[:, 0]
    s1 = s1 + n_extra * p1                # remove zero-padded columns: (0 - pivot)
    q1 = q1 - n_extra * p1 * p1
    mean1 = p1 + s1 * inv_n
    var1 = jnp.maximum(q1 * inv_n - (s1 * inv_n) ** 2, 0.0)
    scale1 = params["bn1_gamma"] * jax.lax.rsqrt(var1 + BN_EPS)
    shift1 = params["bn1_beta"] - mean1 * scale1
    w1f = params["w1"].T * scale1[None, :]                   # [c_in, c2], BN1 folded
    b1f = params["w1"].T @ shift1 + params["b1"]             # [c_in]
    pivot2 = jnp.maximum(w1f @ mean1 + b1f, 0.0)[:, None]    # ~ h at the batch mean

    # ---- pass 2: h = relu(Lin1(BN1(x))) + BN2 stats -------------------------
    hT, s2, q2 = _lin_relu_stats_pass(xT, w1f, b1f[:, None], pivot2, tile,
                                      num_tiles, storage_dtype, vmem_limit)
    h_pad = jnp.maximum(b1f, 0.0)                            # exact h of a padded column
    d_pad = h_pad - pivot2[:, 0]
    s2 = s2 - n_extra * d_pad
    q2 = q2 - n_extra * d_pad * d_pad
    mean2 = pivot2[:, 0] + s2 * inv_n
    var2 = jnp.maximum(q2 * inv_n - (s2 * inv_n) ** 2, 0.0)
    scale2 = params["bn2_gamma"] * jax.lax.rsqrt(var2 + BN_EPS)
    shift2 = params["bn2_beta"] - mean2 * scale2
    w2f = params["w2"].T * scale2[None, :]                   # [c_out, c_in], BN2 folded
    b2f = (params["w2"].T @ shift2 + params["b2"])[:, None]

    # ---- pass 3: y = relu(Lin2(BN2(h))) -------------------------------------
    yT = _lin_relu_pass(hT, w2f, b2f, tile, num_tiles, vmem_limit)
    if channel_major_out:
        return yT[:, :n_atoms]
    return yT[:, :n_atoms].T


# ----------------------------------------------------------------------------
# Plain-numpy glue: graph neighborhoods + simplified transfer1 gather.
# ----------------------------------------------------------------------------
def nhoods(adj, nhops):
    """k-hop neighborhoods (including self) as a boolean reachability matrix."""
    a = (adj + np.eye(adj.shape[0], dtype=adj.dtype)) > 0
    reach = a.copy()
    for _ in range(nhops - 1):
        reach = (reach @ a) > 0
    return reach


def transfer1_matrix(x_nodes, reach):
    """Simplified ptensors1.transfer1: for each target neighborhood N_i the
    target tensor has |N_i| rows and 2*C channels:
      block0[j] = x[j]                    (first-order / identity placement)
      block1[j] = sum_{k in N_i} x[k]     (zeroth-order reduce + broadcast)
    Returns the stacked matrix [sum_i |N_i|, 2*C] and the atoms list.
    """
    # TODO(synk): exact ptens.ptensors1.transfer1 linmap semantics approximated.
    # TODO(synk): move this gather in-kernel (scalar-prefetched atom offsets).
    rows, atoms = [], []
    n = reach.shape[0]
    for i in range(n):
        nbrs = np.nonzero(reach[i])[0]
        atoms.append(nbrs.tolist())
        nb_sum = x_nodes[nbrs].sum(axis=0)
        for j in nbrs:
            rows.append(np.concatenate([x_nodes[j], nb_sum]))
    return np.stack(rows).astype(np.float32), atoms


def init_params(key, channels_in, channels_out):
    k1, k2 = jax.random.split(key)
    cin2 = channels_in * 2

    def lin_init(k, fan_in, fan_out):
        bound = 1.0 / np.sqrt(fan_in)
        kw, kb = jax.random.split(k)
        # stored [in, out] so the row-layout reference does h @ W
        w = jax.random.uniform(kw, (fan_in, fan_out), jnp.float32, -bound, bound)
        b = jax.random.uniform(kb, (fan_out,), jnp.float32, -bound, bound)
        return w, b

    w1, b1 = lin_init(k1, cin2, channels_in)
    w2, b2 = lin_init(k2, channels_in, channels_out)
    return {
        "bn1_gamma": jnp.ones((cin2,), jnp.float32),
        "bn1_beta": jnp.zeros((cin2,), jnp.float32),
        "w1": w1, "b1": b1,
        "bn2_gamma": jnp.ones((channels_in,), jnp.float32),
        "bn2_beta": jnp.zeros((channels_in,), jnp.float32),
        "w2": w2, "b2": b2,
    }


def reference_forward(x1, p):
    m1 = x1.mean(0)
    v1 = ((x1 - m1) ** 2).mean(0)
    h = (x1 - m1) * jax.lax.rsqrt(v1 + BN_EPS) * p["bn1_gamma"] + p["bn1_beta"]
    h = jnp.maximum(h @ p["w1"] + p["b1"], 0.0)
    m2 = h.mean(0)
    v2 = ((h - m2) ** 2).mean(0)
    h = (h - m2) * jax.lax.rsqrt(v2 + BN_EPS) * p["bn2_gamma"] + p["bn2_beta"]
    return jnp.maximum(h @ p["w2"] + p["b2"], 0.0)


if __name__ == "__main__":
    channels_in, channels_out, nhops = 4, 8, 1
    num_nodes = 8

    key = jax.random.PRNGKey(0)
    k_x, k_p, k_big = jax.random.split(key, 3)

    # ring graph of 8 nodes
    adj = np.zeros((num_nodes, num_nodes), dtype=np.float32)
    for i in range(num_nodes):
        adj[i, (i + 1) % num_nodes] = 1.0
        adj[(i + 1) % num_nodes, i] = 1.0

    # per-node ptensors1 features (each source tensor over a single atom)
    x_nodes = np.asarray(
        jax.random.normal(k_x, (num_nodes, channels_in), jnp.float32))

    reach = nhoods(adj, nhops)
    x1_np, atoms = transfer1_matrix(x_nodes, reach)      # [N_atoms, 2*C_in]
    x1 = jnp.asarray(x1_np)

    params = init_params(k_p, channels_in, channels_out)
    y_ref = reference_forward(x1, params)

    # exact-storage path (f32 activations) — tight tolerance
    y32 = jax.block_until_ready(
        conv_layer_forward(x1, params, storage_dtype=jnp.float32))
    np.testing.assert_allclose(np.asarray(y32), np.asarray(y_ref),
                               rtol=1e-4, atol=1e-4)

    # default fast path (bf16 activation storage, f32 stats/accumulation)
    ybf = jax.block_until_ready(conv_layer_forward(x1, params))
    np.testing.assert_allclose(np.asarray(ybf), np.asarray(y_ref),
                               rtol=5e-2, atol=5e-2)

    # larger synthetic matrix view: exercises multi-tile grid, padded-atom
    # stat correction and the non-zero-mean (shifted-variance) path
    x_big = jax.random.normal(k_big, (1000, 2 * channels_in), jnp.float32) * 2.0 + 0.5
    y_big = jax.block_until_ready(
        conv_layer_forward(x_big, params, storage_dtype=jnp.float32))
    y_big_ref = reference_forward(x_big, params)
    np.testing.assert_allclose(np.asarray(y_big), np.asarray(y_big_ref),
                               rtol=1e-4, atol=1e-4)

    # y together with `atoms` is the matrix view of the output ptensors1
    # (ptens.ptensors1.from_matrix(y, atoms)).
    print("KERNEL_OK")
</pallas_src>

<mosaic_0001>
module attributes {stable_mosaic.version = 11 : i64} {
  func.func @_transpose_stats_kernel(%arg0: i32, %arg1: memref<128x8xf32, #tpu.memory_space<vmem>>, %arg2: memref<8x1xf32, #tpu.memory_space<vmem>>, %arg3: memref<8x128xf32, #tpu.memory_space<vmem>>, %arg4: memref<1x8x1xf32, #tpu.memory_space<vmem>>, %arg5: memref<1x8x1xf32, #tpu.memory_space<vmem>>) attributes {dimension_semantics = [#tpu.dimension_semantics<parallel>], iteration_bounds = array<i64: 1>, scalar_prefetch = 0 : i64, scratch_operands = 0 : i64, tpu.core_type = #tpu.core_type<tc>, window_params = [{transform_indices = @transform_0, window_bounds = array<i64: 128, 8>}, {pipeline_mode = #tpu.pipeline_mode<synchronous>, transform_indices = @transform_1, window_bounds = array<i64: 8, 1>}, {transform_indices = @transform_2, window_bounds = array<i64: 8, 128>}, {transform_indices = @transform_3, window_bounds = array<i64: 1, 8, 1>}, {transform_indices = @transform_4, window_bounds = array<i64: 1, 8, 1>}]} {
    %c0 = arith.constant 0 : index
    %c0_0 = arith.constant 0 : index
    %0 = vector.load %arg1[%c0, %c0_0] : memref<128x8xf32, #tpu.memory_space<vmem>>, vector<128x8xf32>
    %1 = tpu.transpose %0, [1, 0] : vector<128x8xf32> -> vector<8x128xf32>
    %c0_1 = arith.constant 0 : index
    %c0_2 = arith.constant 0 : index
    %2 = vector.load %arg3[%c0_1, %c0_2] : memref<8x128xf32, #tpu.memory_space<vmem>>, vector<8x128xf32>
    tpu.vector_store %arg3[%c0_1, %c0_2], %1 {strides = array<i32>} : memref<8x128xf32, #tpu.memory_space<vmem>>, vector<8x128xf32>,
    %c0_3 = arith.constant 0 : index
    %c0_4 = arith.constant 0 : index
    %3 = vector.load %arg2[%c0_3, %c0_4] : memref<8x1xf32, #tpu.memory_space<vmem>>, vector<8x1xf32>
    %4 = vector.broadcast %3 : vector<8x1xf32> to vector<8x128xf32>
    %5 = arith.subf %1, %4 : vector<8x128xf32>
    %cst = arith.constant dense<0.000000e+00> : vector<8xf32>
    %6 = vector.multi_reduction <add>, %5, %cst [1] : vector<8x128xf32> to vector<8xf32>
    %7 = vector.shape_cast %6 : vector<8xf32> to vector<8x1xf32>
    %8 = vector.shape_cast %7 : vector<8x1xf32> to vector<1x8x1xf32>
    %c0_5 = arith.constant 0 : index
    %c0_6 = arith.constant 0 : index
    %c0_7 = arith.constant 0 : index
    %9 = vector.load %arg4[%c0_5, %c0_6, %c0_7] : memref<1x8x1xf32, #tpu.memory_space<vmem>>, vector<1x8x1xf32>
    tpu.vector_store %arg4[%c0_5, %c0_6, %c0_7], %8 {strides = array<i32>} : memref<1x8x1xf32, #tpu.memory_space<vmem>>, vector<1x8x1xf32>,
    %10 = arith.mulf %5, %5 : vector<8x128xf32>
    %cst_8 = arith.constant dense<0.000000e+00> : vector<8xf32>
    %11 = vector.multi_reduction <add>, %10, %cst_8 [1] : vector<8x128xf32> to vector<8xf32>
    %12 = vector.shape_cast %11 : vector<8xf32> to vector<8x1xf32>
    %13 = vector.shape_cast %12 : vector<8x1xf32> to vector<1x8x1xf32>
    %c0_9 = arith.constant 0 : index
    %c0_10 = arith.constant 0 : index
    %c0_11 = arith.constant 0 : index
    %14 = vector.load %arg5[%c0_9, %c0_10, %c0_11] : memref<1x8x1xf32, #tpu.memory_space<vmem>>, vector<1x8x1xf32>
    tpu.vector_store %arg5[%c0_9, %c0_10, %c0_11], %13 {strides = array<i32>} : memref<1x8x1xf32, #tpu.memory_space<vmem>>, vector<1x8x1xf32>,
    return
  }
  func.func @transform_0(%arg0: i32) -> (i32, i32) {
    %c0_i32 = arith.constant 0 : i32
    %c0_i32_0 = arith.constant 0 : i32
    return %arg0, %c0_i32 : i32, i32
  }
  func.func @transform_1(%arg0: i32) -> (i32, i32) {
    %c0_i32 = arith.constant 0 : i32
    %c0_i32_0 = arith.constant 0 : i32
    %c0_i32_1 = arith.constant 0 : i32
    return %c0_i32, %c0_i32_0 : i32, i32
  }
  func.func @transform_2(%arg0: i32) -> (i32, i32) {
    %c0_i32 = arith.constant 0 : i32
    %c0_i32_0 = arith.constant 0 : i32
    return %c0_i32, %arg0 : i32, i32
  }
  func.func @transform_3(%arg0: i32) -> (i32, i32, i32) {
    %c0_i32 = arith.constant 0 : i32
    %c0_i32_0 = arith.constant 0 : i32
    %c0_i32_1 = arith.constant 0 : i32
    return %arg0, %c0_i32, %c0_i32_0 : i32, i32, i32
  }
  func.func @transform_4(%arg0: i32) -> (i32, i32, i32) {
    %c0_i32 = arith.constant 0 : i32
    %c0_i32_0 = arith.constant 0 : i32
    %c0_i32_1 = arith.constant 0 : i32
    return %arg0, %c0_i32, %c0_i32_0 : i32, i32, i32
  }
}

</mosaic_0001>

<bundles_post_ra>
// kernel: tpu_custom_call.1
= control target key start
LH: loop header
LB: loop body
LE: loop exit
PB: predicated region body
PF: predicated region fallthrough
CT: control target
= control target key end

     0   :  { %s220_s0 = inlined_call_operand.vmem [shape: f32[128,8], index: 0, kind: input, shape index: {}]   ;;  %s221_s1 = inlined_call_operand.vmem [shape: f32[8,1], index: 1, kind: input, shape index: {}]   ;;  %s222_s2 = inlined_call_operand.hbm [shape: f32[8,128], index: 2, kind: output, shape index: {0}]   ;;  %s223_s3 = inlined_call_operand.vmem [shape: f32[1,8,1], index: 3, kind: output, shape index: {1}]   ;;  %s224_s4 = inlined_call_operand.vmem [shape: f32[1,8,1], index: 4, kind: output, shape index: {2}]  }
   0x1   :  { %v15_v0 = vld [vmem:[%s220_s0] sm:$0xff] }
   0x2   :  { %31 = vxpose.xlu0.b32.start [1/16] (narrow) %v15_v0, 8 }
   0x3   :  { %10 = vsyncpa [#allocation3], 0  ;;  %v16_v1 = vld [vmem:[%s220_s0 + $0x8] sm:$0xff]  ;;  %v17_v2 = vld [vmem:[%s220_s0 + $0x10] sm:$0xff]  ;;  %v133_v4 = vmov 0   ;;  %s134_s22 = smov [#allocation2]  }
   0x4   :  { %v64_v3 = vld [vmem:[%s221_s1] sm:$0xff]  ;;  %105 = vset.pattern.permute.xlu1 %v133_v4  ;;  %v18_v5 = vld [vmem:[%s220_s0 + $0x18] sm:$0xff]  ;;  %v20_v7 = vld [vmem:[%s220_s0 + $0x28] sm:$0xff]  ;;  %s84_s23 = sshll.u32 %s134_s22, 4  ;;  %s86_s26 = sshll.u32 %s222_s2, 4  ;;  %vm73_vm0 = vcmask 7168   ;;  %s85_s23 = int_to_ptr.vmem [resolvable:$true] %s84_s23  ;;  %s87_s26 = int_to_ptr.hbm [resolvable:$true] %s86_s26 }
   0x5   :  { %67 = vperm.xlu1 %105, %v64_v3   ;;  %v19_v6 = vld [vmem:[%s220_s0 + $0x20] sm:$0xff]  ;;  %v21_v8 = vld [vmem:[%s220_s0 + $0x30] sm:$0xff]  ;;  %v22_v9 = vld [vmem:[%s220_s0 + $0x38] sm:$0xff] }
   0x6   :  { %v23_v10 = vld [vmem:[%s220_s0 + $0x40] sm:$0xff]  ;;  %v24_v11 = vld [vmem:[%s220_s0 + $0x48] sm:$0xff]  ;;  %v25_v12 = vld [vmem:[%s220_s0 + $0x50] sm:$0xff] }
   0x7   :  { %v26_v13 = vld [vmem:[%s220_s0 + $0x58] sm:$0xff]  ;;  %v27_v14 = vld [vmem:[%s220_s0 + $0x60] sm:$0xff]  ;;  %v28_v15 = vld [vmem:[%s220_s0 + $0x68] sm:$0xff] }
   0x8   :  { %v29_v16 = vld [vmem:[%s220_s0 + $0x70] sm:$0xff]  ;;  %v30_v17 = vld [vmem:[%s220_s0 + $0x78] sm:$0xff] }
   0xa   :  { %32 = vxpose.xlu0.b32.cont [2/16] (narrow) %v16_v1, 8 }
  0x12   :  { %33 = vxpose.xlu0.b32.cont [3/16] (narrow) %v17_v2, 8 }
  0x1a   :  { %34 = vxpose.xlu0.b32.cont [4/16] (narrow) %v18_v5, 8 }
  0x22   :  { %35 = vxpose.xlu0.b32.cont [5/16] (narrow) %v19_v6, 8 }
  0x2a   :  { %36 = vxpose.xlu0.b32.cont [6/16] (narrow) %v20_v7, 8 }
  0x32   :  { %37 = vxpose.xlu0.b32.cont [7/16] (narrow) %v21_v8, 8 }
  0x3a   :  { %38 = vxpose.xlu0.b32.cont [8/16] (narrow) %v22_v9, 8 }
  0x42   :  { %39 = vxpose.xlu0.b32.cont [9/16] (narrow) %v23_v10, 8 }
  0x4a   :  { %40 = vxpose.xlu0.b32.cont [10/16] (narrow) %v24_v11, 8 }
  0x52   :  { %41 = vxpose.xlu0.b32.cont [11/16] (narrow) %v25_v12, 8 }
  0x5a   :  { %42 = vxpose.xlu0.b32.cont [12/16] (narrow) %v26_v13, 8 }
  0x62   :  { %43 = vxpose.xlu0.b32.cont [13/16] (narrow) %v27_v14, 8 }
  0x6a   :  { %44 = vxpose.xlu0.b32.cont [14/16] (narrow) %v28_v15, 8 }
  0x72   :  { %45 = vxpose.xlu0.b32.cont [15/16] (narrow) %v29_v16, 8 }
  0x77   :  { %v68_v18 = vpop.permute.xlu1 %67 }
  0x7a   :  { %46 = vxpose.xlu0.b32.end [16/16] (narrow) %v30_v17, 8 }
  0xa6   :  { %v47_v19 = vpop.trf.xlu0 }
  0xa7   :  { %63 = vst [vmem:[#allocation2] sm:$0xff] %v47_v19  ;;  %v70_v20 = vsub.f32 %v47_v19, %v68_v18 }
  0xa8   :  { %89 = dma.vmem_to_hbm [thread:$0]  %s85_s23, 128, %s87_s26, [#allocation3]  }
  0xa9   :  { %71 = vadd.xlane.f32.xlu1 %v70_v20  ;;  %v75_v21 = vmul.f32 %v70_v20, %v70_v20 }
  0xab   :  { %76 = vadd.xlane.f32.xlu2 %v75_v21 }
  0xe1   :  { %106 = vset.pattern.permute.xlu0 %v133_v4 }
 0x11c   :  { %v72_v22 = vpop.xlane.xlu1 %71 }
 0x11d   :  { %74 = vst.msk [vmem:[%s223_s3] sm:$0xff] %vm73_vm0, %v72_v22 }
 0x11e   :  { %v77_v23 = vpop.xlane.xlu2 %76 }
 0x11f   :  { %78 = vst.msk [vmem:[%s224_s4] sm:$0xff] %vm73_vm0, %v77_v23 }
 0x120   :  { %131 = dma.done.wait [#allocation3], 128  }
 0x121   :  { %132 = vsyncadd [#allocation3], 4294967168 }
 0x122   :  { %102 = vsyncpa [#allocation3], 1 }

</bundles_post_ra>
